<compile_context>
chip_gen: v7x
topology: tpu7x:2x2x1
jax: 0.10.0
libtpu: 0.0.40
codegen_flags: <defaults>
</compile_context>

<pallas_src>
import jax
import jax.numpy as jnp
from jax import lax
from jax.experimental import pallas as pl
from jax.experimental.pallas import tpu as pltpu


def _round_up(v, m):
    return ((v + m - 1) // m) * m


def weighted_proximity(x, labels, targets, weights, *, use_bf16_matmul=False,
                       block_rows=None):
    """WeightedProximity forward (default hyperparameters).

    x: (B, D), labels: (B,) int, targets: (C, D), weights: (B,) -> scalar f32.
    """
    B, D = x.shape
    C, _ = targets.shape

    # --- lane-dense class dimension (padded target rows are zero; never selected) ---
    C_pad = _round_up(C, 128)

    # --- batch tile size: multiple of 8, capped so the double-buffered x tile and the
    #     (bt, C_pad) f32 intermediates stay comfortably inside scoped VMEM on every
    #     generation (incl. v7x's 32 MiB scoped default) ---
    if block_rows is None:
        bt = min(512, _round_up(B, 8))
        while bt > 8 and (2 * bt * D * 4 + 4 * bt * C_pad * 4) > 8 * 1024 * 1024:
            bt //= 2
        bt = max(8, _round_up(bt, 8))
    else:
        bt = max(8, _round_up(block_rows, 8))
    num_blocks = pl.cdiv(B, bt)

    # --- wrapper-side, grid-invariant prep (tiny): padded targets and ||t||^2 ---
    t_f32 = jnp.pad(targets.astype(jnp.float32), ((0, C_pad - C), (0, 0)))
    t2 = jnp.sum(t_f32 * t_f32, axis=1).reshape(1, C_pad)          # exact f32 norms
    t_in = t_f32.astype(jnp.bfloat16) if use_bf16_matmul else t_f32

    labels2 = labels.astype(jnp.int32).reshape(B, 1)
    weights2 = weights.astype(jnp.float32).reshape(B, 1)

    def _kernel(x_ref, labels_ref, w_ref, t_ref, t2_ref, out_ref):
        # x_ref: (bt, D) f32, labels_ref: (bt, 1) i32, w_ref: (bt, 1) f32,
        # t_ref: (C_pad, D) f32/bf16 (resident), t2_ref: (1, C_pad) f32 (resident),
        # out_ref: (8, 128) f32 -- per-grid-block partial sum broadcast over the tile.
        x = x_ref[...]                                              # f32
        x2 = jnp.sum(x * x, axis=1, keepdims=True)                  # (bt, 1) exact f32

        t = t_ref[...]
        # MXU: contract feature dims (no explicit transpose); bf16 inputs when enabled,
        # accumulation stays f32 via preferred_element_type.
        xt = lax.dot_general(x.astype(t.dtype), t, (((1,), (1,)), ((), ())),
                             preferred_element_type=jnp.float32)    # (bt, C_pad)

        distmat = x2 + t2_ref[...] - 2.0 * xt                       # (bt, C_pad)

        # One-hot selection of distmat[i, labels[i]].  Padded classes (>= C) never
        # match since labels < C.  A one-hot row-sum equals the reference masked
        # row-max (exactly one nonzero per row); clamping after selection equals
        # clamping the full matrix first (clip is elementwise).
        classes = lax.broadcasted_iota(jnp.int32, distmat.shape, 1)
        mask = (labels_ref[...] == classes).astype(jnp.float32)
        selected = jnp.sum(mask * distmat, axis=1, keepdims=True)   # (bt, 1)
        selected = jnp.clip(selected, 1e-6, 1e6)

        # Ragged-tail handling: the last grid block may read rows past B (garbage,
        # possibly NaN).  jnp.where is NaN-safe, so those rows contribute exactly 0.
        row0 = pl.program_id(0) * bt
        rows = row0 + lax.broadcasted_iota(jnp.int32, (bt, 1), 0)
        contrib = jnp.where(rows < B, w_ref[...] * selected, 0.0)   # (bt, 1)

        partial = jnp.sum(contrib, axis=(0, 1), keepdims=True)      # (1, 1)
        out_ref[...] = jnp.broadcast_to(partial, out_ref.shape)

    partial_tiles = pl.pallas_call(
        _kernel,
        out_shape=jax.ShapeDtypeStruct((num_blocks * 8, 128), jnp.float32),
        grid=(num_blocks,),
        in_specs=[
            pl.BlockSpec((bt, D), lambda i: (i, 0)),         # x tile (pipelined)
            pl.BlockSpec((bt, 1), lambda i: (i, 0)),         # labels tile
            pl.BlockSpec((bt, 1), lambda i: (i, 0)),         # weights tile
            pl.BlockSpec((C_pad, D), lambda i: (0, 0)),      # targets (resident)
            pl.BlockSpec((1, C_pad), lambda i: (0, 0)),      # ||t||^2 (resident)
        ],
        out_specs=pl.BlockSpec((8, 128), lambda i: (i, 0)),  # per-block partial tile
        compiler_params=pltpu.CompilerParams(
            dimension_semantics=("parallel",),               # 2 TCs on v7x
            vmem_limit_bytes=32 * 1024 * 1024,
        ),
    )(x.astype(jnp.float32), labels2, weights2, t_in, t2)

    partials = partial_tiles[0::8, 0]                        # one scalar per grid block
    return jnp.sum(partials) / (512.0 * B)


def _reference(x, labels, targets, weights):
    # pure-JAX reference mirroring the PyTorch forward (default args)
    C = targets.shape[0]
    distmat = (jnp.sum(x ** 2, axis=1, keepdims=True)
               + jnp.sum(targets ** 2, axis=1, keepdims=True).T
               - 2.0 * x @ targets.T)
    distmat = jnp.clip(distmat, 1e-6, 1e6)
    mask = (labels[:, None] == jnp.arange(C)[None, :]).astype(distmat.dtype)
    res = weights * jnp.max(mask * distmat, axis=1) / 512.0
    return jnp.mean(res)


if __name__ == "__main__":
    # small shapes consistent with the module: batch=8, feat=32, num_classes=10
    B, D, C = 8, 32, 10

    key = jax.random.PRNGKey(0)
    kx, kt, kl, kw = jax.random.split(key, 4)
    x = jax.random.normal(kx, (B, D), dtype=jnp.float32)
    targets = jax.random.normal(kt, (C, D), dtype=jnp.float32)
    labels = jax.random.randint(kl, (B,), 0, C, dtype=jnp.int32)
    weights = jax.random.uniform(kw, (B,), dtype=jnp.float32)

    ref = _reference(x, labels, targets, weights)

    # f32 MXU path
    loss = weighted_proximity(x, labels, targets, weights)
    jax.block_until_ready(loss)
    assert jnp.allclose(loss, ref, rtol=1e-5, atol=1e-6), (loss, ref)

    # bf16 MXU fast path (v6e/v7x) -- validated at loss-level tolerance
    loss_bf16 = weighted_proximity(x, labels, targets, weights, use_bf16_matmul=True)
    jax.block_until_ready(loss_bf16)
    assert jnp.allclose(loss_bf16, ref, rtol=5e-2, atol=1e-3), (loss_bf16, ref)

    # multi-block grid with a ragged, non-multiple-of-8 tail (exercises tiling,
    # in-kernel tail masking, padded classes, per-block partial sums)
    B2, D2, C2 = 300, 64, 17
    kx2, kt2, kl2, kw2 = jax.random.split(jax.random.PRNGKey(1), 4)
    x2 = jax.random.normal(kx2, (B2, D2), dtype=jnp.float32)
    targets2 = jax.random.normal(kt2, (C2, D2), dtype=jnp.float32)
    labels2 = jax.random.randint(kl2, (B2,), 0, C2, dtype=jnp.int32)
    weights2 = jax.random.uniform(kw2, (B2,), dtype=jnp.float32)

    loss2 = weighted_proximity(x2, labels2, targets2, weights2, block_rows=128)
    jax.block_until_ready(loss2)
    ref2 = _reference(x2, labels2, targets2, weights2)
    assert jnp.allclose(loss2, ref2, rtol=1e-5, atol=1e-6), (loss2, ref2)

    # single-block default heuristic on the same ragged shapes
    loss3 = weighted_proximity(x2, labels2, targets2, weights2)
    jax.block_until_ready(loss3)
    assert jnp.allclose(loss3, ref2, rtol=1e-5, atol=1e-6), (loss3, ref2)

    print("KERNEL_OK")
</pallas_src>

<mosaic_0001>
module attributes {stable_mosaic.version = 11 : i64} {
  func.func @_kernel(%arg0: i32, %arg1: memref<8x32xf32, #tpu.memory_space<vmem>>, %arg2: memref<8x1xi32, #tpu.memory_space<vmem>>, %arg3: memref<8x1xf32, #tpu.memory_space<vmem>>, %arg4: memref<128x32xf32, #tpu.memory_space<vmem>>, %arg5: memref<1x128xf32, #tpu.memory_space<vmem>>, %arg6: memref<8x128xf32, #tpu.memory_space<vmem>>) attributes {dimension_semantics = [#tpu.dimension_semantics<parallel>], iteration_bounds = array<i64: 1>, scalar_prefetch = 0 : i64, scratch_operands = 0 : i64, tpu.core_type = #tpu.core_type<tc>, window_params = [{transform_indices = @transform_0, window_bounds = array<i64: 8, 32>}, {transform_indices = @transform_1, window_bounds = array<i64: 8, 1>}, {transform_indices = @transform_2, window_bounds = array<i64: 8, 1>}, {pipeline_mode = #tpu.pipeline_mode<synchronous>, transform_indices = @transform_3, window_bounds = array<i64: 128, 32>}, {pipeline_mode = #tpu.pipeline_mode<synchronous>, transform_indices = @transform_4, window_bounds = array<i64: 1, 128>}, {transform_indices = @transform_5, window_bounds = array<i64: 8, 128>}]} {
    %c0 = arith.constant 0 : index
    %c0_0 = arith.constant 0 : index
    %0 = vector.load %arg1[%c0, %c0_0] : memref<8x32xf32, #tpu.memory_space<vmem>>, vector<8x32xf32>
    %1 = arith.mulf %0, %0 : vector<8x32xf32>
    %cst = arith.constant dense<0.000000e+00> : vector<8xf32>
    %2 = vector.multi_reduction <add>, %1, %cst [1] : vector<8x32xf32> to vector<8xf32>
    %3 = vector.shape_cast %2 : vector<8xf32> to vector<8x1xf32>
    %c0_1 = arith.constant 0 : index
    %c0_2 = arith.constant 0 : index
    %4 = vector.load %arg4[%c0_1, %c0_2] : memref<128x32xf32, #tpu.memory_space<vmem>>, vector<128x32xf32>
    %cst_3 = arith.constant dense<0.000000e+00> : vector<8x128xf32>
    %5 = tpu.matmul %0, %4, %cst_3 {dimension_numbers = #tpu.dot_dimension_numbers<[1], [1], [0], [0], [0, 0, 1, 0], [], []>} : vector<8x32xf32>, vector<128x32xf32>, vector<8x128xf32> -> vector<8x128xf32>
    %c0_4 = arith.constant 0 : index
    %c0_5 = arith.constant 0 : index
    %6 = vector.load %arg5[%c0_4, %c0_5] : memref<1x128xf32, #tpu.memory_space<vmem>>, vector<1x128xf32>
    %7 = vector.broadcast %3 : vector<8x1xf32> to vector<8x128xf32>
    %8 = vector.broadcast %6 : vector<1x128xf32> to vector<8x128xf32>
    %9 = arith.addf %7, %8 : vector<8x128xf32>
    %cst_6 = arith.constant 2.000000e+00 : f32
    %10 = vector.broadcast %cst_6 : f32 to vector<8x128xf32>
    %11 = arith.mulf %10, %5 : vector<8x128xf32>
    %12 = arith.subf %9, %11 : vector<8x128xf32>
    %13 = tpu.iota {dimensions = array<i32: 1>} : vector<8x128xi32>
    %c0_7 = arith.constant 0 : index
    %c0_8 = arith.constant 0 : index
    %14 = vector.load %arg2[%c0_7, %c0_8] : memref<8x1xi32, #tpu.memory_space<vmem>>, vector<8x1xi32>
    %15 = vector.broadcast %14 : vector<8x1xi32> to vector<8x128xi32>
    %16 = arith.cmpi eq, %15, %13 : vector<8x128xi32>
    %17 = arith.extui %16 : vector<8x128xi1> to vector<8x128xi32>
    %18 = arith.sitofp %17 : vector<8x128xi32> to vector<8x128xf32>
    %19 = arith.mulf %18, %12 : vector<8x128xf32>
    %cst_9 = arith.constant dense<0.000000e+00> : vector<8xf32>
    %20 = vector.multi_reduction <add>, %19, %cst_9 [1] : vector<8x128xf32> to vector<8xf32>
    %21 = vector.shape_cast %20 : vector<8xf32> to vector<8x1xf32>
    %cst_10 = arith.constant 9.99999997E-7 : f32
    %cst_11 = arith.constant 1.000000e+06 : f32
    %22 = vector.broadcast %cst_10 : f32 to vector<8x1xf32>
    %23 = arith.maximumf %22, %21 : vector<8x1xf32>
    %24 = vector.broadcast %cst_11 : f32 to vector<8x1xf32>
    %25 = arith.minimumf %24, %23 : vector<8x1xf32>
    %c8_i32 = arith.constant 8 : i32
    %26 = arith.muli %arg0, %c8_i32 : i32
    %27 = tpu.iota {dimensions = array<i32: 0>} : vector<8x1xi32>
    %28 = vector.broadcast %26 : i32 to vector<8x1xi32>
    %29 = arith.addi %28, %27 : vector<8x1xi32>
    %c8_i32_12 = arith.constant 8 : i32
    %30 = vector.broadcast %c8_i32_12 : i32 to vector<8x1xi32>
    %31 = arith.cmpi slt, %29, %30 : vector<8x1xi32>
    %c0_13 = arith.constant 0 : index
    %c0_14 = arith.constant 0 : index
    %32 = vector.load %arg3[%c0_13, %c0_14] : memref<8x1xf32, #tpu.memory_space<vmem>>, vector<8x1xf32>
    %33 = arith.mulf %32, %25 : vector<8x1xf32>
    %cst_15 = arith.constant 0.000000e+00 : f32
    %34 = vector.broadcast %cst_15 : f32 to vector<8x1xf32>
    %35 = arith.select %31, %33, %34 : vector<8x1xi1>, vector<8x1xf32>
    %36 = vector.shape_cast %35 : vector<8x1xf32> to vector<1x8x1xf32>
    %cst_16 = arith.constant dense<0.000000e+00> : vector<1xf32>
    %37 = vector.multi_reduction <add>, %36, %cst_16 [1, 2] : vector<1x8x1xf32> to vector<1xf32>
    %38 = vector.shape_cast %37 : vector<1xf32> to vector<1x1x1xf32>
    %39 = vector.extract %38[0, 0, 0] : f32 from vector<1x1x1xf32>
    %40 = vector.broadcast %39 : f32 to vector<1x1xf32>
    %41 = vector.shape_cast %40 : vector<1x1xf32> to vector<1x1xf32>
    %42 = vector.broadcast %41 : vector<1x1xf32> to vector<8x128xf32>
    %c0_17 = arith.constant 0 : index
    %c0_18 = arith.constant 0 : index
    %43 = vector.load %arg6[%c0_17, %c0_18] : memref<8x128xf32, #tpu.memory_space<vmem>>, vector<8x128xf32>
    tpu.vector_store %arg6[%c0_17, %c0_18], %42 {strides = array<i32>} : memref<8x128xf32, #tpu.memory_space<vmem>>, vector<8x128xf32>,
    return
  }
  func.func @transform_0(%arg0: i32) -> (i32, i32) {
    %c0_i32 = arith.constant 0 : i32
    %c0_i32_0 = arith.constant 0 : i32
    return %arg0, %c0_i32 : i32, i32
  }
  func.func @transform_1(%arg0: i32) -> (i32, i32) {
    %c0_i32 = arith.constant 0 : i32
    %c0_i32_0 = arith.constant 0 : i32
    return %arg0, %c0_i32 : i32, i32
  }
  func.func @transform_2(%arg0: i32) -> (i32, i32) {
    %c0_i32 = arith.constant 0 : i32
    %c0_i32_0 = arith.constant 0 : i32
    return %arg0, %c0_i32 : i32, i32
  }
  func.func @transform_3(%arg0: i32) -> (i32, i32) {
    %c0_i32 = arith.constant 0 : i32
    %c0_i32_0 = arith.constant 0 : i32
    %c0_i32_1 = arith.constant 0 : i32
    return %c0_i32, %c0_i32_0 : i32, i32
  }
  func.func @transform_4(%arg0: i32) -> (i32, i32) {
    %c0_i32 = arith.constant 0 : i32
    %c0_i32_0 = arith.constant 0 : i32
    %c0_i32_1 = arith.constant 0 : i32
    return %c0_i32, %c0_i32_0 : i32, i32
  }
  func.func @transform_5(%arg0: i32) -> (i32, i32) {
    %c0_i32 = arith.constant 0 : i32
    %c0_i32_0 = arith.constant 0 : i32
    return %arg0, %c0_i32 : i32, i32
  }
}

</mosaic_0001>

<bundles_post_ra>
// kernel: tpu_custom_call.1
= control target key start
LH: loop header
LB: loop body
LE: loop exit
PB: predicated region body
PF: predicated region fallthrough
CT: control target
= control target key end

     0   :  { %vm23_vm0 = vcmask 261120   ;;  %v359_v2 = vmov 0.0|0.0   ;;  %vm360_vm2 = vmmov 0   ;;  %v361_v5 = vmov 0.0   ;;  %s490_s0 = inlined_call_operand.vmem [shape: f32[8,32], index: 0, kind: input, shape index: {}]   ;;  %s491_s1 = inlined_call_operand.vmem [shape: s32[8,1], index: 1, kind: input, shape index: {}]   ;;  %s492_s2 = inlined_call_operand.vmem [shape: f32[8,1], index: 2, kind: input, shape index: {}]   ;;  %s493_s3 = inlined_call_operand.vmem [shape: f32[128,32], index: 3, kind: input, shape index: {}]   ;;  %s494_s4 = inlined_call_operand.vmem [shape: f32[1,128], index: 4, kind: input, shape index: {}]   ;;  %s495_s5 = inlined_call_operand.hbm [shape: f32[8,128], index: 5, kind: output, shape index: {}]  }
   0x1   :  { %v27_v0 = vld [vmem:[%s493_s3] sm:$0xff]  ;;  %v28_v1 = vld [vmem:[%s493_s3 + $0x8] sm:$0xff]  ;;  %295 = vmatprep.subr.bf16.mxu0 %v359_v2  ;;  %vm402_vm1 = vmpackc.low %vm23_vm0, %vm23_vm0  ;;  %292 = vmatprep.mubr.msk.f32.mxu0 %vm360_vm2, %v361_v5  ;;  %v362_v6 = vmov 0  }
   0x2   :  { %v296_v3 = vpack.c.bf16 %v28_v1, %v27_v0  ;;  %334 = vset.pattern.permute.xlu0 %v362_v6  ;;  %v29_v7 = vld [vmem:[%s493_s3 + $0x10] sm:$0xff]  ;;  %v30_v8 = vld [vmem:[%s493_s3 + $0x18] sm:$0xff]  ;;  %v21_v9 = vld [vmem:[%s490_s0] sm:$0xff] }
   0x3   :  { %v22_v10 = vmul.f32 %v21_v9, %v21_v9 }
   0x4   :  { %298 = vmatpush3.bf16.xpose.msk.msra.mxu0 %vm402_vm1, %v296_v3 }
   0x5   :  { %299 = vmatprep.subr.bf16.mxu0 %v359_v2 }
   0x6   :  { %10 = vsyncpa [#allocation3], 0  ;;  %v300_v11 = vpack.c.bf16 %v30_v8, %v29_v7  ;;  %v24_v12 = vsel %vm23_vm0, %v22_v10, 0.0  ;;  %v31_v13 = vld [vmem:[%s493_s3 + $0x20] sm:$0xff]  ;;  %v32_v14 = vld [vmem:[%s493_s3 + $0x28] sm:$0xff]  ;;  %v174_v32 = vlaneseq  ;;  %vm197_vm4 = vcmask 7168  }
   0x7   :  { %25 = vadd.xlane.f32.xlu0 %v24_v12  ;;  %v304_v15 = vpack.c.bf16 %v32_v14, %v31_v13  ;;  %v33_v16 = vld [vmem:[%s493_s3 + $0x30] sm:$0xff]  ;;  %v34_v17 = vld [vmem:[%s493_s3 + $0x38] sm:$0xff]  ;;  %v35_v19 = vld [vmem:[%s493_s3 + $0x40] sm:$0xff] }
   0x8   :  { %v308_v18 = vpack.c.bf16 %v34_v17, %v33_v16  ;;  %v36_v20 = vld [vmem:[%s493_s3 + $0x48] sm:$0xff]  ;;  %v176_v21 = vld [vmem:[%s491_s1] sm:$0xff]  ;;  %v37_v23 = vld [vmem:[%s493_s3 + $0x50] sm:$0xff]  ;;  %v175_v34 = vand.u32 127, %v174_v32 }
   0x9   :  { %v312_v22 = vpack.c.bf16 %v36_v20, %v35_v19  ;;  %v38_v24 = vld [vmem:[%s493_s3 + $0x58] sm:$0xff]  ;;  %v39_v26 = vld [vmem:[%s493_s3 + $0x60] sm:$0xff]  ;;  %v40_v27 = vld [vmem:[%s493_s3 + $0x68] sm:$0xff] }
   0xa   :  { %v316_v25 = vpack.c.bf16 %v38_v24, %v37_v23  ;;  %v320_v28 = vpack.c.bf16 %v40_v27, %v39_v26  ;;  %v41_v29 = vld [vmem:[%s493_s3 + $0x70] sm:$0xff]  ;;  %v42_v30 = vld [vmem:[%s493_s3 + $0x78] sm:$0xff]  ;;  %v241_v36 = vld [vmem:[%s494_s4] ss:$0 sm:$0xff]  ;;  %s363_s4 = smov [#allocation2]  }
   0xb   :  { %v324_v31 = vpack.c.bf16 %v42_v30, %v41_v29  ;;  %v194_v46 = vld [vmem:[%s492_s2] sm:$0xff]  ;;  %s216_s30 = sshll.u32 %s363_s4, 4  ;;  %s217_s30 = int_to_ptr.vmem [resolvable:$true] %s216_s30 }
   0xc   :  { %302 = vmatpush3.bf16.xpose.msk.msra.mxu0 %vm402_vm1, %v300_v11  ;;  %s335_s2 = scalar_lea.vmem %s217_s30, 128  ;;  %p340_p1 = scmp.lt.s32.totalorder %s217_s30, %s217_s30 }
   0xd   :  { %303 = vmatprep.subr.bf16.mxu0 %v359_v2  ;;  %p336_p0 = scmp.ne.s32.totalorder %s217_s30, %s335_s2  ;;  %p341_p2 = scmp.lt.s32.totalorder %s335_s2, %s335_s2 }
   0xf   :  { %p342_p3 = por %p341_p2, %p340_p1 }
  0x11   :  { %p343_p4 = pnand %p342_p3, %p336_p0 }
  0x14   :  { %306 = vmatpush3.bf16.xpose.msk.msra.mxu0 %vm402_vm1, %v304_v15 }
  0x15   :  { %307 = vmatprep.subr.bf16.mxu0 %v359_v2 }
  0x1c   :  { %310 = vmatpush3.bf16.xpose.msk.msra.mxu0 %vm402_vm1, %v308_v18 }
  0x1d   :  { %311 = vmatprep.subr.bf16.mxu0 %v359_v2  ;;  %178 = vperm.xlu0 %334, %v176_v21  }
  0x24   :  { %314 = vmatpush3.bf16.xpose.msk.msra.mxu0 %vm402_vm1, %v312_v22 }
  0x25   :  { %315 = vmatprep.subr.bf16.mxu0 %v359_v2 }
  0x2c   :  { %318 = vmatpush3.bf16.xpose.msk.msra.mxu0 %vm402_vm1, %v316_v25 }
  0x2d   :  { %319 = vmatprep.subr.bf16.mxu0 %v359_v2 }
  0x34   :  { %322 = vmatpush3.bf16.xpose.msk.msra.mxu0 %vm402_vm1, %v320_v28 }
  0x35   :  { %323 = vmatprep.subr.bf16.mxu0 %v359_v2 }
  0x3c   :  { %326 = vmatpush3.bf16.xpose.msk.msra.mxu0 %vm402_vm1, %v324_v31 }
  0x43   :  { %293 = vmatmul.mubr.msk.f32.vlgmr.msra.gmra.mrb[0].mxu0 %vm23_vm0, %v21_v9 }
  0x94   :  { %v26_v33 = vpop.xlane.xlu0 %25 }
  0x95   :  { %v171_v38 = vadd.f32 %v241_v36, %v26_v33 }
  0x9c   :  { %v179_v35 = vpop.permute.xlu0 %178 }
  0x9d   :  { %vm180_vm3 = vcmp.eq.s32.totalorder %v179_v35, %v175_v34 }
  0x9e   :  { %v242_v41 = vsel %vm180_vm3, 1.0, %v361_v5 }
 0x116   :  { %v160_v37 = vpop.f32.mrb[0].mxu0 }
 0x117   :  { %v172_v39 = vmul.f32 2.0, %v160_v37  ;;  %v294_v40 = vpop.f32.mrb[1].mxu0 }
 0x119   :  { %v173_v42 = vsub.f32 %v171_v38, %v172_v39 }
 0x11b   :  { %v183_v43 = vmul.f32 %v242_v41, %v173_v42 }
 0x11d   :  { %184 = vadd.xlane.f32.xlu1 %v183_v43 }
 0x1aa   :  { %v185_v44 = vpop.xlane.xlu1 %184 }
 0x1ab   :  { %v186_v45 = vmax.f32 %v185_v44, 1e-06 }
 0x1ad   :  { %v187_v47 = vmin.f32 %v186_v45, 1000000.0 }
 0x1af   :  { %v195_v48 = vmul.f32 %v194_v46, %v187_v47 }
 0x1b1   :  { %v198_v49 = vsel %vm197_vm4, %v195_v48, 0.0 }
 0x1b2   :  { %199 = vadd.xlane.f32.xlu1 %v198_v49 }
 0x23f   :  { %v200_v50 = vpop.xlane.xlu1 %199 }
 0x240   :  { %v201_v51 = vrot.slane %v200_v50, 4 }
 0x242   :  { %v202_v52 = vadd.f32 %v201_v51, %v200_v50 }
 0x244   :  { %v203_v53 = vrot.slane %v202_v52, 2 }
 0x246   :  { %v204_v54 = vadd.f32 %v203_v53, %v202_v52 }
 0x248   :  { %v205_v55 = vrot.slane %v204_v54, 1 }
 0x24a   :  { %v206_v56 = vadd.f32 %v205_v55, %v204_v54 }
 0x24c   :  { %327 = vpush %v206_v56 }
 0x27d   :  { %s328_s6 = spop %327 }
 0x27e   :  { %v208_v57 = vstv %s328_s6 }
 0x27f   :  { %209 = vst [vmem:[#allocation2] sm:$0xff] %v208_v57 }
 0x280   :  { %346 = shalt.err (!%p343_p4)
}
 0x281   :  { %s347_s8 = scalar_lea.hbm %s495_s5, 128 }
 0x282   :  { %p348_p5 = scmp.ne.s32.totalorder %s495_s5, %s347_s8  ;;  %p351_p6 = scmp.lt.u32.totalorder %s347_s8, %s495_s5 }
 0x284   :  { %p353_p7 = pnand %p351_p6, %p348_p5 }
 0x286   :  { %356 = shalt.err (!%p353_p7)
}
 0x287   :  { %219 = dma.vmem_to_hbm [thread:$0]  %s217_s30, 128, %s495_s5, [#allocation3]  }
 0x288   :  { %357 = dma.done.wait [#allocation3], 128  }
 0x289   :  { %358 = vsyncadd [#allocation3], 4294967168 }
 0x28a   :  { %223 = vsyncpa [#allocation3], 1 }

</bundles_post_ra>
